<compile_context>
chip_gen: v6e
topology: v6e:2x2x1
jax: 0.10.0
libtpu: 0.0.40
codegen_flags: <defaults>
</compile_context>

<pallas_src>
import functools
import numpy as np
import jax
import jax.numpy as jnp
from jax.experimental import pallas as pl
from jax.experimental.pallas import tpu as pltpu


# ---------------------------------------------------------------------------
# Haar filters, built exactly as get_wav() builds them in the PyTorch reference.
# ---------------------------------------------------------------------------
def make_haar_filters():
    L = (1.0 / np.sqrt(2.0)) * np.ones((1, 2))
    H = (1.0 / np.sqrt(2.0)) * np.ones((1, 2))
    H[0, 0] = -H[0, 0]
    LL = np.transpose(L) * L
    LH = np.transpose(L) * H
    HL = np.transpose(H) * L
    HH = np.transpose(H) * H
    return np.stack([LL, LH, HL, HH]).astype(np.float32)   # (4, 2, 2)


def make_h_combiner(chunk_in, dtype):
    """Horizontal-only Haar combiner (separable form), shape (chunk_in, chunk_in).

    For a vertically pre-combined row v with `chunk_in` columns:
        (v @ M)[:, :wo]  -> horizontal L pass:  0.5*v[2w] + 0.5*v[2w+1]
        (v @ M)[:, wo:]  -> horizontal H pass: -0.5*v[2w] + 0.5*v[2w+1]
    with wo = chunk_in // 2.  Applied to v_L = top+bot it yields [LL | LH];
    applied to v_H = bot-top it yields [HL | HH] (the same matrix serves both
    because the vertical sign is already folded into v_H).  Entries are exactly
    0 / +-0.5, so they are exact in bf16.
    """
    f = make_haar_filters()
    wo = chunk_in // 2
    M = np.zeros((chunk_in, chunk_in), dtype=np.float32)
    w = np.arange(wo)
    for j in range(2):
        M[2 * w + j, w] = f[0, 0, j]          # LL / HL column weights (L pass)
        M[2 * w + j, wo + w] = f[1, 0, j]     # LH / HH column weights (H pass)
    return jnp.asarray(M, dtype=dtype)


# ---------------------------------------------------------------------------
# Kernel
# ---------------------------------------------------------------------------
def _wavepool_kernel(x_ref, m_ref, o_ref, *, w_half, chunk, n_chunks):
    # x_ref: (1, tr, 2*W2) strips; one row = [top_row | bottom_row] of a 2xW2
    #        pixel block (lane-dense streaming view of the image).
    # m_ref: (chunk, chunk) constant horizontal Haar combiner.
    # o_ref: (1, 4, tr, Wo) output tile, subband-major (LL, LH, HL, HH).
    m = m_ref[...]
    wo_c = chunk // 2
    for j in range(n_chunks):                 # static unroll; n_chunks == 1 typically
        s = j * chunk
        top = x_ref[0, :, s:s + chunk]
        bot = x_ref[0, :, w_half + s:w_half + s + chunk]
        v_l = top + bot                       # vertical L pass (free VALU slot)
        v_h = bot - top                       # vertical H pass
        # DEFAULT precision: one bf16 MXU pass, f32 accumulation (review item 1).
        y_l = jnp.dot(v_l, m, preferred_element_type=jnp.float32)   # [LL | LH]
        y_h = jnp.dot(v_h, m, preferred_element_type=jnp.float32)   # [HL | HH]
        d = j * wo_c
        o_ref[0, 0, :, d:d + wo_c] = y_l[:, :wo_c].astype(o_ref.dtype)
        o_ref[0, 1, :, d:d + wo_c] = y_l[:, wo_c:].astype(o_ref.dtype)
        o_ref[0, 2, :, d:d + wo_c] = y_h[:, :wo_c].astype(o_ref.dtype)
        o_ref[0, 3, :, d:d + wo_c] = y_h[:, wo_c:].astype(o_ref.dtype)


# ---------------------------------------------------------------------------
# Tiling heuristics
# ---------------------------------------------------------------------------
def _pick_row_tile(n_images, rows_per_image, bytes_per_row,
                   target_block_bytes=8 << 20, min_steps=8):
    """Row tile for the per-image row axis.

    Targets ~8 MiB of in+out bytes per grid step (2 MiB blocks lose ~25% to the
    ~0.35us per-step overhead on v7x's 3.2 TB/s HBM) while keeping >= min_steps
    total steps so the DMA pipeline has depth and both v7x TensorCores get work.
    """
    r = rows_per_image
    if r <= 8:
        return r
    tr = min(max(8, target_block_bytes // max(bytes_per_row, 1)),
             max(8, (n_images * r) // min_steps))
    if tr >= r:
        return r
    return max(8, (tr // 8) * 8)


def _pick_col_chunk(w2, max_chunk_cols=512):
    """Input-column chunk for the in-kernel chunked dot.

    Caps the combiner at (chunk, chunk) and the per-output contraction at
    `chunk` MACs, keeping wide images HBM-bound.  Falls back to a single chunk
    when no even divisor <= max_chunk_cols exists (still correct, just a larger
    resident combiner)."""
    if w2 <= max_chunk_cols:
        return w2, 1
    for n in range(2, w2 + 1):
        if w2 % n == 0:
            c = w2 // n
            if c <= max_chunk_cols and c % 2 == 0:
                return c, n
    return w2, 1


# ---------------------------------------------------------------------------
# Wrapper
# ---------------------------------------------------------------------------
@functools.partial(jax.jit, static_argnames=("out_dtype",))
def wave_pool(x, out_dtype=None):
    """Haar WavePool forward.

    x: (N, C, H, W).  Returns (N, 4, C, H//2, W//2) with the subband axis in
    (LL, LH, HL, HH) order; reshaping to (N, 4*C, Ho, Wo) is free and equals
    the torch.cat([LL, LH, HL, HH], dim=1) layout the Xception backbone
    consumes.  Pass bf16 x / out_dtype for peak HBM bandwidth (Haar weights are
    exact in bf16; accumulation is f32 on the MXU).  Odd H/W follow VALID-conv
    semantics (trailing row/col dropped), matching the PyTorch stride-2 conv.
    """
    N, C, H, W = x.shape
    Ho, Wo = H // 2, W // 2
    if Ho == 0 or Wo == 0:
        raise ValueError("H and W must both be >= 2")
    if (H, W) != (2 * Ho, 2 * Wo):
        x = x[:, :, :2 * Ho, :2 * Wo]
    if out_dtype is None:
        out_dtype = x.dtype
    W2 = 2 * Wo
    R = C * Ho

    # Free, layout-preserving reshape: one row == the 2 x W2 pixel strip feeding
    # one output row of one (n, c) plane -> x is streamed from HBM exactly once.
    x2d = x.reshape(N, R, 2 * W2)

    chunk, n_chunks = _pick_col_chunk(W2)
    M = make_h_combiner(chunk, x.dtype)          # entries exactly 0 / +-0.5

    in_item = jnp.dtype(x.dtype).itemsize
    out_item = jnp.dtype(out_dtype).itemsize
    bytes_per_row = 2 * W2 * in_item + 4 * Wo * out_item
    tr = _pick_row_tile(N, R, bytes_per_row)
    grid = (N, pl.cdiv(R, tr))

    # VMEM budget: Pallas double-buffers EVERY block, *including* the constant
    # combiner (review correctness item), so count 2x of each with lane/sublane
    # padding, plus an estimate of in-kernel temporaries and headroom.
    def _padded(rows, cols, item):
        return ((rows + 7) // 8 * 8) * ((cols + 127) // 128 * 128) * item
    in_blk = _padded(tr, 2 * W2, in_item)
    out_blk = 4 * _padded(tr, Wo, out_item)
    m_blk = _padded(chunk, chunk, in_item)
    temps = 6 * tr * chunk * 4                   # v_l/v_h/top/bot + f32 dot results
    vmem_limit = int(min(56 << 20,
                         max(16 << 20, 2 * (in_blk + out_blk + m_blk) + temps + (4 << 20))))

    macs = N * R * n_chunks * 2 * chunk * chunk  # 2 dots/chunk, N-dim == chunk
    cost = pl.CostEstimate(
        flops=2 * macs,
        transcendentals=0,
        bytes_accessed=(N * R * 2 * W2 * in_item
                        + N * 4 * R * Wo * out_item
                        + chunk * chunk * in_item),
    )

    kernel = functools.partial(_wavepool_kernel, w_half=W2, chunk=chunk,
                               n_chunks=n_chunks)

    out = pl.pallas_call(
        kernel,
        grid=grid,
        in_specs=[
            pl.BlockSpec((1, tr, 2 * W2), lambda n, i: (n, i, 0)),   # lane-dense strips
            pl.BlockSpec((chunk, chunk), lambda n, i: (0, 0)),       # constant combiner
        ],
        out_specs=pl.BlockSpec((1, 4, tr, Wo), lambda n, i: (n, 0, i, 0)),
        out_shape=jax.ShapeDtypeStruct((N, 4, R, Wo), out_dtype),
        compiler_params=pltpu.CompilerParams(
            dimension_semantics=("parallel", "parallel"),
            vmem_limit_bytes=vmem_limit,
        ),
        cost_estimate=cost,
    )(x2d, M)

    # Free reshape to the consumer layout (N, 4, C, Ho, Wo).
    return out.reshape(N, 4, C, Ho, Wo)


# ---------------------------------------------------------------------------
# Pure-JAX reference (exact f32 arithmetic, same grouped 2x2/stride-2 conv
# semantics as the PyTorch WavePool module).
# ---------------------------------------------------------------------------
def wavepool_reference(x):
    x = jnp.asarray(x, jnp.float32)
    N, C, H, W = x.shape
    x = x[:, :, :2 * (H // 2), :2 * (W // 2)]
    f = jnp.asarray(make_haar_filters())
    a = x[:, :, 0::2, 0::2]
    b = x[:, :, 0::2, 1::2]
    c = x[:, :, 1::2, 0::2]
    d = x[:, :, 1::2, 1::2]
    subs = [f[k, 0, 0] * a + f[k, 0, 1] * b + f[k, 1, 0] * c + f[k, 1, 1] * d
            for k in range(4)]
    return jnp.stack(subs, axis=1)               # (N, 4, C, Ho, Wo)


if __name__ == "__main__":
    key = jax.random.PRNGKey(0)
    k1, k2, k3 = jax.random.split(key, 3)

    # --- primary test: f32 input, f32 output --------------------------------
    N, C, H, W = 2, 4, 16, 16
    x = jax.random.uniform(k1, (N, C, H, W), jnp.float32, minval=-1.0, maxval=1.0)
    out = jax.block_until_ready(wave_pool(x))
    assert out.shape == (N, 4, C, H // 2, W // 2) and out.dtype == jnp.float32
    ref = wavepool_reference(x)
    # DEFAULT precision -> one bf16 MXU pass -> ~bf16-level error vs exact f32.
    err = float(jnp.max(jnp.abs(out - ref)))
    assert jnp.allclose(out, ref, atol=3e-2, rtol=3e-2), f"max|err| = {err}"

    # --- bf16 streaming path (halved input + output HBM traffic) ------------
    out_bf = jax.block_until_ready(wave_pool(x.astype(jnp.bfloat16)))
    assert out_bf.shape == (N, 4, C, H // 2, W // 2) and out_bf.dtype == jnp.bfloat16
    assert jnp.allclose(out_bf.astype(jnp.float32), ref, atol=6e-2, rtol=6e-2)

    # --- odd spatial size: VALID-conv semantics (trailing row/col dropped) --
    x_odd = jax.random.uniform(k2, (1, 3, 17, 15), jnp.float32, minval=-1.0, maxval=1.0)
    out_odd = jax.block_until_ready(wave_pool(x_odd))
    assert out_odd.shape == (1, 4, 3, 8, 7)
    assert jnp.allclose(out_odd, wavepool_reference(x_odd), atol=3e-2, rtol=3e-2)

    # --- wide image: exercises the in-kernel column-chunked combiner --------
    x_wide = jax.random.uniform(k3, (1, 2, 8, 1024), jnp.float32, minval=-1.0, maxval=1.0)
    out_wide = jax.block_until_ready(wave_pool(x_wide))
    assert out_wide.shape == (1, 4, 2, 4, 512)
    assert jnp.allclose(out_wide, wavepool_reference(x_wide), atol=3e-2, rtol=3e-2)

    print("KERNEL_OK")
</pallas_src>

<mosaic_0001>
module attributes {stable_mosaic.version = 11 : i64} {
  func.func @_wavepool_kernel(%arg0: i32, %arg1: i32, %arg2: memref<1x8x32xf32, #tpu.memory_space<vmem>>, %arg3: memref<16x16xf32, #tpu.memory_space<vmem>>, %arg4: memref<1x4x8x8xf32, #tpu.memory_space<vmem>>) attributes {dimension_semantics = [#tpu.dimension_semantics<parallel>, #tpu.dimension_semantics<parallel>], iteration_bounds = array<i64: 2, 4>, scalar_prefetch = 0 : i64, scratch_operands = 0 : i64, tpu.core_type = #tpu.core_type<tc>, window_params = [{transform_indices = @transform_0, window_bounds = array<i64: 1, 8, 32>}, {pipeline_mode = #tpu.pipeline_mode<synchronous>, transform_indices = @transform_1, window_bounds = array<i64: 16, 16>}, {transform_indices = @transform_2, window_bounds = array<i64: 1, 4, 8, 8>}]} {
    %c0 = arith.constant 0 : index
    %c0_0 = arith.constant 0 : index
    %0 = vector.load %arg3[%c0, %c0_0] : memref<16x16xf32, #tpu.memory_space<vmem>>, vector<16x16xf32>
    %c0_1 = arith.constant 0 : index
    %c0_2 = arith.constant 0 : index
    %c0_3 = arith.constant 0 : index
    %1 = vector.load %arg2[%c0_1, %c0_2, %c0_3] : memref<1x8x32xf32, #tpu.memory_space<vmem>>, vector<1x8x16xf32>
    %2 = vector.shape_cast %1 : vector<1x8x16xf32> to vector<8x16xf32>
    %c0_4 = arith.constant 0 : index
    %c0_5 = arith.constant 0 : index
    %c16 = arith.constant 16 : index
    %3 = vector.load %arg2[%c0_4, %c0_5, %c16] : memref<1x8x32xf32, #tpu.memory_space<vmem>>, vector<1x8x16xf32>
    %4 = vector.shape_cast %3 : vector<1x8x16xf32> to vector<8x16xf32>
    %5 = arith.addf %2, %4 : vector<8x16xf32>
    %6 = arith.subf %4, %2 : vector<8x16xf32>
    %cst = arith.constant dense<0.000000e+00> : vector<8x16xf32>
    %7 = tpu.matmul %5, %0, %cst {dimension_numbers = #tpu.dot_dimension_numbers<[1], [0], [0], [1], [0, 0, 1, 1], [], []>} : vector<8x16xf32>, vector<16x16xf32>, vector<8x16xf32> -> vector<8x16xf32>
    %cst_6 = arith.constant dense<0.000000e+00> : vector<8x16xf32>
    %8 = tpu.matmul %6, %0, %cst_6 {dimension_numbers = #tpu.dot_dimension_numbers<[1], [0], [0], [1], [0, 0, 1, 1], [], []>} : vector<8x16xf32>, vector<16x16xf32>, vector<8x16xf32> -> vector<8x16xf32>
    %9 = vector.extract_strided_slice %7 {offsets = [0, 0], sizes = [8, 8], strides = [1, 1]} : vector<8x16xf32> to vector<8x8xf32>
    %c0_7 = arith.constant 0 : index
    %c0_8 = arith.constant 0 : index
    %c0_9 = arith.constant 0 : index
    %c0_10 = arith.constant 0 : index
    %10 = vector.load %arg4[%c0_7, %c0_8, %c0_9, %c0_10] : memref<1x4x8x8xf32, #tpu.memory_space<vmem>>, vector<1x1x8x8xf32>
    %11 = vector.shape_cast %10 : vector<1x1x8x8xf32> to vector<8x8xf32>
    %12 = vector.shape_cast %9 : vector<8x8xf32> to vector<1x1x8x8xf32>
    tpu.vector_store %arg4[%c0_7, %c0_8, %c0_9, %c0_10], %12 {strides = array<i32>} : memref<1x4x8x8xf32, #tpu.memory_space<vmem>>, vector<1x1x8x8xf32>,
    %13 = vector.extract_strided_slice %7 {offsets = [0, 8], sizes = [8, 8], strides = [1, 1]} : vector<8x16xf32> to vector<8x8xf32>
    %c0_11 = arith.constant 0 : index
    %c1 = arith.constant 1 : index
    %c0_12 = arith.constant 0 : index
    %c0_13 = arith.constant 0 : index
    %14 = vector.load %arg4[%c0_11, %c1, %c0_12, %c0_13] : memref<1x4x8x8xf32, #tpu.memory_space<vmem>>, vector<1x1x8x8xf32>
    %15 = vector.shape_cast %14 : vector<1x1x8x8xf32> to vector<8x8xf32>
    %16 = vector.shape_cast %13 : vector<8x8xf32> to vector<1x1x8x8xf32>
    tpu.vector_store %arg4[%c0_11, %c1, %c0_12, %c0_13], %16 {strides = array<i32>} : memref<1x4x8x8xf32, #tpu.memory_space<vmem>>, vector<1x1x8x8xf32>,
    %17 = vector.extract_strided_slice %8 {offsets = [0, 0], sizes = [8, 8], strides = [1, 1]} : vector<8x16xf32> to vector<8x8xf32>
    %c0_14 = arith.constant 0 : index
    %c2 = arith.constant 2 : index
    %c0_15 = arith.constant 0 : index
    %c0_16 = arith.constant 0 : index
    %18 = vector.load %arg4[%c0_14, %c2, %c0_15, %c0_16] : memref<1x4x8x8xf32, #tpu.memory_space<vmem>>, vector<1x1x8x8xf32>
    %19 = vector.shape_cast %18 : vector<1x1x8x8xf32> to vector<8x8xf32>
    %20 = vector.shape_cast %17 : vector<8x8xf32> to vector<1x1x8x8xf32>
    tpu.vector_store %arg4[%c0_14, %c2, %c0_15, %c0_16], %20 {strides = array<i32>} : memref<1x4x8x8xf32, #tpu.memory_space<vmem>>, vector<1x1x8x8xf32>,
    %21 = vector.extract_strided_slice %8 {offsets = [0, 8], sizes = [8, 8], strides = [1, 1]} : vector<8x16xf32> to vector<8x8xf32>
    %c0_17 = arith.constant 0 : index
    %c3 = arith.constant 3 : index
    %c0_18 = arith.constant 0 : index
    %c0_19 = arith.constant 0 : index
    %22 = vector.load %arg4[%c0_17, %c3, %c0_18, %c0_19] : memref<1x4x8x8xf32, #tpu.memory_space<vmem>>, vector<1x1x8x8xf32>
    %23 = vector.shape_cast %22 : vector<1x1x8x8xf32> to vector<8x8xf32>
    %24 = vector.shape_cast %21 : vector<8x8xf32> to vector<1x1x8x8xf32>
    tpu.vector_store %arg4[%c0_17, %c3, %c0_18, %c0_19], %24 {strides = array<i32>} : memref<1x4x8x8xf32, #tpu.memory_space<vmem>>, vector<1x1x8x8xf32>,
    return
  }
  func.func @transform_0(%arg0: i32, %arg1: i32) -> (i32, i32, i32) {
    %c0_i32 = arith.constant 0 : i32
    %c0_i32_0 = arith.constant 0 : i32
    return %arg0, %arg1, %c0_i32 : i32, i32, i32
  }
  func.func @transform_1(%arg0: i32, %arg1: i32) -> (i32, i32) {
    %c0_i32 = arith.constant 0 : i32
    %c0_i32_0 = arith.constant 0 : i32
    %c0_i32_1 = arith.constant 0 : i32
    return %c0_i32, %c0_i32_0 : i32, i32
  }
  func.func @transform_2(%arg0: i32, %arg1: i32) -> (i32, i32, i32, i32) {
    %c0_i32 = arith.constant 0 : i32
    %c0_i32_0 = arith.constant 0 : i32
    %c0_i32_1 = arith.constant 0 : i32
    return %arg0, %c0_i32, %arg1, %c0_i32_0 : i32, i32, i32, i32
  }
}

</mosaic_0001>

<bundles_post_ra>
// kernel: wave_pool.1
= control target key start
LH: loop header
LB: loop body
LE: loop exit
PB: predicated region body
PF: predicated region fallthrough
CT: control target
= control target key end

     0   :  { %7 = vsyncpa [#allocation3], 0  ;;  %s824_s0 = inlined_call_operand.vmem [shape: f32[2,32,32], index: 0, kind: input, shape index: {}]   ;;  %s825_s1 = inlined_call_operand.vmem [shape: f32[16,16], index: 1, kind: input, shape index: {}]   ;;  %s826_s2 = inlined_call_operand.hbm [shape: f32[2,4,32,8], index: 2, kind: output, shape index: {}]  }
   0x1   :  { %9 = vsyncpa [#allocation3 + $0x1], 0  ;;  %s675_s9 = smov 0   ;;  %s677_s10 = smov 0  }
   0x2   :  { %s679_s11 = smov 0   ;;  %s681_s12 = smov 0  }
   0x3   :  { %s683_s13 = smov 0   ;;  %s685_s14 = smov 0  }
   0x4   :  { %s687_s15 = smov 0   ;;  %s689_s16 = smov 0  }
   0x5 LB: > { %s440_s17 = sadd.s32 4294967295, %s649_s16   ;;  %s441_s18 = sadd.s32 4294967294, %s649_s16   ;;  %s649_s16 = sphi %s689_s16, %s15_s16   ;;  %s645_s15 = sphi %s687_s15, %s835_s15   ;;  %s641_s14 = sphi %s685_s14, %s834_s14   ;;  %s637_s13 = sphi %s683_s13, %s833_s13   ;;  %s633_s12 = sphi %s681_s12, %s832_s12   ;;  %s629_s11 = sphi %s679_s11, %s831_s11   ;;  %s625_s10 = sphi %s677_s10, %s830_s10   ;;  %s621_s9 = sphi %s675_s9, %s829_s9  }
   0x6   : > { %s24_s19 = sadd.s32 1, %s641_s14  ;;  %s27_s20 = sadd.s32 1, %s645_s15 }
   0x7   : > { %p25_p0 = scmp.ge.s32.totalorder %s24_s19, 4  ;;  %p95_p1 = scmp.ne.s32.totalorder %s629_s11, %s625_s10 }
   0x8   : > { %p96_p2 = scmp.eq.s32.totalorder %s440_s17, 7  ;;  %p101_p5 = scmp.ne.s32.totalorder %s625_s10, %s621_s9 }
   0x9   : > { %s837_s19 = smov (%p25_p0, %s24_s19), 0  ;;  %s839_s20 = smov (!%p25_p0, %s27_s20), %s645_s15 }
   0xa   : > { %s81_s21 = ssub.s32 %s641_s14, %s837_s19  ;;  %p726_p3 = por %p96_p2, %p95_p1 }
   0xb   : > { %p29_p4 = scmp.ge.s32.totalorder %s839_s20, 2  ;;  %p102_p6 = scmp.eq.s32.totalorder %s441_s18, 7 }
   0xc   : > { %p444_p7 = scmp.ge.s32.totalorder %s649_s16, 1  ;;  %p134_p9 = scmp.lt.s32.totalorder %s649_s16, 9 }
   0xd   : > { %s841_s20 = smov (%p29_p4, %s839_s20), 0  ;;  %p735_p8 = por %p102_p6, %p101_p5 }
   0xe   : > { %s80_s24 = ssub.s32 %s645_s15, %s841_s20  ;;  %s85_s25 = sadd.s32 1, %s629_s11 }
   0xf   : > { %s82_s26 = sor.u32 %s81_s21, %s80_s24  ;;  %p135_p10 = pnand %p444_p7, %p134_p9 }
  0x10   : > { %p83_p11 = scmp.eq.s32.totalorder %s82_s26, 0  ;;  %p159_p12 = scmp.lt.s32.totalorder (!%p135_p10), %s637_s13, 1 }
  0x11   : > { %138 = sbr.rel (%p135_p10) target bundleno = 584 (0x248), region = 28  ;;  %p161_p13 = scmp.lt.s32.totalorder (!%p135_p10), %s633_s12, 3 }
  0x12   : > { %s744_s27 = scalar_select %p83_p11, %s629_s11, %s85_s25  }
  0x13   : > { %s653_s24 = smov (!%p135_p10), 16   ;;  %s654_s25 = smov (!%p135_p10), 112  }
  0x14   : > { %s156_s26 = sand.u32 (!%p135_p10), 1, %s625_s10   ;;  %s655_s30 = smov (!%p135_p10), 120  }
  0x15   : > { %s445_s28 = sshll.u32 (!%p135_p10), %s156_s26, 5  ;;  %s454_s3 = sshll.u32 (!%p135_p10), %s637_s13, 4 }
  0x16   : > { %v168_v0 = vld [vmem:[%s825_s1 + $0x8] sm:$0xff]  ;;  %v651_v1 = vmov 0.0   ;;  %v167_v2 = vld [vmem:[%s825_s1] sm:$0xff]  ;;  %s160_s4 = scalar_select %p159_p12, %s637_s13, 1  ;;  %vm652_vm0 = vmmov 0   ;;  %vm179_vm1 = vcmask 130048  }
  0x17   : > { %464 = vmatprep.subr.mxu0 %v651_v1  ;;  %471 = vmatprep.subr.mxu1 %v651_v1  ;;  %s162_s5 = scalar_select %p161_p13, %s633_s12, 3  ;;  %vm328_vm2 = vcmask 64512  }
  0x18   : > { %465 = vmatpush3.msra.mxu0 %v168_v0  ;;  %468 = vmatprep.mubr.msk.f32.mxu0 %vm652_vm0, %v651_v1  ;;  %s446_s6 = sshll.u32 %s160_s4, 2  ;;  %s158_s29 = scalar_lea.vmem [#allocation2], %s445_s28 }
  0x19   : > { %466 = vmatprep.subr.mxu0 %v651_v1  ;;  %472 = vmatpush3.msra.mxu1 %v168_v0  ;;  %s164_s7 = sadd.s32 %s446_s6, %s162_s5  ;;  %s356_s4 = sadd.s32 %s633_s12, %s454_s3 }
  0x1a   : > { %467 = vmatpush3.msra.mxu0 %v167_v2  ;;  %473 = vmatprep.subr.mxu1 %v651_v1  ;;  %s447_s8 = sshll.u32 %s164_s7, 3  ;;  %s359_s5 = sshll.u32 %s158_s29, 4  ;;  %s765_s5 = int_to_ptr.vmem [resolvable:$true] %s359_s5 }
  0x1b   : > { %474 = vmatpush3.msra.mxu1 %v167_v2  ;;  %475 = vmatprep.mubr.msk.f32.mxu1 %vm652_vm0, %v651_v1  ;;  %s166_s21 = scalar_lea.vmem %s824_s0, %s447_s8  ;;  %s455_s6 = sshll.u32 %s356_s4, 7 }
  0x1c   : > { %v169_v3 = vld [vmem:[%s166_s21] sm:$0xff]  ;;  %s770_s17 = scalar_lea.hbm %s826_s2, %s455_s6  ;;  %s773_s18 = scalar_lea.sflag [#allocation3], %s156_s26 }
  0x1d   : > { %175 = vrot.lane.b32.xlu0 %v169_v3, %s653_s24  ;;  %s557_s21 = scalar_lea.vmem %s765_s5, 512  ;;  %s656_s12 = smov [#allocation2]  }
  0x1e   : > { %p558_p0 = scmp.ne.s32.totalorder %s765_s5, %s557_s21  ;;  %s561_s13 = sshll.u32 %s656_s12, 4  ;;  %s562_s13 = int_to_ptr.vmem [resolvable:$false] %s561_s13 }
  0x1f   : > { %s563_s24 = scalar_lea.vmem %s562_s13, 1024  ;;  %p564_p4 = scmp.lt.s32.totalorder %s765_s5, %s562_s13 }
  0x20   : > { %p559_p1 = pnand %p558_p0, %p726_p3  ;;  %p565_p5 = scmp.lt.s32.totalorder %s563_s24, %s557_s21 }
  0x21   : > { %171 = vrot.lane.b32.xlu0 %v169_v3, %s654_s25 }
  0x22   : > { %p560_p2 = pneg %p559_p1  ;;  %p566_p6 = por %p565_p5, %p564_p4 }
  0x24   : > { %p567_p7 = pnand %p566_p6, %p560_p2 }
  0x8f   : > { %v176_v4 = vpop.permute.xlu0 %175 }
  0x90   : > { %v178_v5 = vsub.f32 %v169_v3, %v176_v4 }
  0x92   : > { %254 = vrot.lane.b32.xlu1 %v178_v5, %s654_s25 }
  0x93   : > { %v172_v6 = vpop.permute.xlu0 %171 }
  0x94   : > { %v174_v7 = vadd.f32 %v172_v6, %v169_v3 }
  0x96   : > { %469 = vmatmul.mubr.msk.f32.vlgmr.msra.gmra.mxu0 %vm179_vm1, %v174_v7 }
 0x104   : > { %v255_v8 = vpop.permute.xlu1 %254 }
 0x105   : > { %476 = vmatmul.mubr.msk.f32.vlgmr.msra.gmra.mxu1 %vm179_vm1, %v255_v8 }
 0x156   : > { %v249_v9 = vpop.f32.mrf.mxu0 }
 0x157   : > { %329 = vst.msk [vmem:[%s158_s29] sm:$0xff] %vm328_vm2, %v249_v9  ;;  %331 = vrot.lane.b32.xlu1 %v249_v9, %s655_s30 }
 0x158   : > { %v470_v10 = vpop.f32.mrf.mxu0 }
 0x1c5   : > { %v324_v11 = vpop.f32.mrf.mxu1 }
 0x1c6   : > { %451 = vst.msk [vmem:[%s158_s29 + $0x10] sm:$0xff] %vm328_vm2, %v324_v11  ;;  %339 = vrot.lane.b32.xlu0 %v324_v11, %s655_s30 }
 0x1c7   : > { %v477_v12 = vpop.f32.mrf.mxu1 }
 0x1c9   : > { %v332_v13 = vpop.permute.xlu1 %331 }
 0x1ca   : > { %450 = vst.msk [vmem:[%s158_s29 + $0x8] sm:$0xff] %vm328_vm2, %v332_v13 }
 0x238   : > { %v340_v14 = vpop.permute.xlu0 %339 }
 0x239   : > { %452 = vst.msk [vmem:[%s158_s29 + $0x18] sm:$0xff] %vm328_vm2, %v340_v14 }
 0x23a   : > { %570 = shalt.err (!%p567_p7)
}
 0x23b   : > { %s571_s25 = scalar_lea.hbm %s770_s17, 512  ;;  %s575_s29 = scalar_lea.hbm %s826_s2, 4096 }
 0x23c   : > { %p572_p9 = scmp.ne.s32.totalorder %s770_s17, %s571_s25  ;;  %p576_p12 = scmp.lt.s32.totalorder %s770_s17, %s826_s2 }
 0x23d   : > { %p577_p13 = scmp.lt.s32.totalorder %s575_s29, %s571_s25 }
 0x23e   : > { %p573_p10 = pnand %p572_p9, %p726_p3 }
 0x23f   : > { %p578_p0 = por %p577_p13, %p576_p12 }
 0x240   : > { %p574_p11 = pneg %p573_p10 }
 0x242   : > { %p579_p1 = pnand %p578_p0, %p574_p11 }
 0x244   : > { %582 = shalt.err (!%p579_p1)
}
 0x245   : > { %s657_s4 = smov 128   ;;  %s658_s6 = smov 512  }
 0x246   : > { %s659_s7 = smov 8  }
 0x247   : > { %478 = dma.vmem_to_hbm [thread:$0]  (%p726_p3), %s765_s5, 512, %s770_s17, %s773_s18, %s657_s4, %s658_s6, %s659_s7  }
 0x248 PF: > { %p484_p2 = scmp.ge.s32.totalorder %s649_s16, 2  ;;  %s374_s8 = sand.u32 1, %s621_s9  }
 0x249   : > { %s375_s21 = scalar_lea.sflag [#allocation3], %s374_s8 }
 0x24a   : > { %p481_p4 = pnand %p484_p2, %p735_p8 }
 0x24c   : > { %p482_p5 = pneg %p481_p4 }
 0x24e   : > { %616 = dma.done.wait (%p482_p5), %s375_s21, 512  }
 0x24f   : > { %618 = vsyncadd (%p482_p5), %s375_s21, 4294966784  ;;  %s15_s16 = sadd.s32 1, %s649_s16   ;;  %s829_s9 = smov %s625_s10 }
 0x250   : > { %p12_p6 = scmp.ge.s32.totalorder %s15_s16, 10   ;;  %s830_s10 = smov %s629_s11 }
 0x251   : > { %s831_s11 = smov %s744_s27  ;;  %s832_s12 = smov %s641_s14 }
 0x252   : > { %s833_s13 = smov %s645_s15  ;;  %s834_s14 = smov %s837_s19 }
 0x253   : > { %s835_s15 = smov %s841_s20  ;;  %14 = sbr.rel (!%p12_p6) target bundleno = 5 (0x5), region = 66 }
 0x258   :  { %380 = vsyncpa [#allocation3], 1 }
 0x259   :  { %382 = vsyncpa [#allocation3 + $0x1], 1 }

</bundles_post_ra>
